<compile_context>
chip_gen: v7x
topology: tpu7x:2x2x1
jax: 0.10.0
libtpu: 0.0.40
codegen_flags: <defaults>
</compile_context>

<pallas_src>
import functools
import math

import jax
import jax.numpy as jnp
from jax.experimental import pallas as pl
from jax.experimental.pallas import tpu as pltpu

BLOCK_SIZE = 128   # max sequence length covered by the module's causal buffer
DROPOUT = 0.2


# --------------------------------------------------------------------------- #
# Row-tiled linear:  y = dropout?(x @ W + b?)
# --------------------------------------------------------------------------- #
def _dropout_bits(shape, row_offset, seed_u32):
    """Uniform 24-bit integers from a counter-based hash of the *global* element index.
    Pure VPU integer ops (mul/xor/shift): portable across Mosaic and interpret mode,
    deterministic, and independent of grid order / tile size ("parallel"-safe)."""
    n_cols = shape[1]
    row = jax.lax.broadcasted_iota(jnp.int32, shape, 0) + row_offset
    col = jax.lax.broadcasted_iota(jnp.int32, shape, 1)
    h = (row * n_cols + col).astype(jnp.uint32)
    h = h ^ (seed_u32 * jnp.uint32(0x9E3779B9))            # per-call / per-layer salt
    h = (h ^ (h >> 16)) * jnp.uint32(0x7FEB352D)           # lowbias32 avalanche hash
    h = (h ^ (h >> 15)) * jnp.uint32(0x846CA68B)
    h = h ^ (h >> 16)
    return (h >> 8).astype(jnp.int32)                      # uniform in [0, 2^24)


def _linear_kernel(seed_ref, x_ref, w_ref, b_ref, o_ref, *,
                   has_bias, apply_dropout, tile_m, compute_dtype):
    x = x_ref[...].astype(compute_dtype)
    w = w_ref[...].astype(compute_dtype)
    y = jnp.dot(x, w, preferred_element_type=jnp.float32)     # MXU, f32 accumulate
    if has_bias:
        y = y + b_ref[...]                                     # f32 epilogue (v5e: no bf16 VPU)
    if apply_dropout:
        # Inverted dropout, p = 0.2.  TODO(synk): not bit-identical to torch's RNG stream
        # (same Bernoulli(0.2) distribution).
        r = _dropout_bits(y.shape, pl.program_id(0) * tile_m,
                          seed_ref[0].astype(jnp.uint32))
        thresh = int(DROPOUT * (1 << 24))
        y = jnp.where(r >= thresh, y * (1.0 / (1.0 - DROPOUT)), 0.0)
    o_ref[...] = y.astype(o_ref.dtype)


def _pick_tile_m(m, k, n, esize):
    """Largest row tile (multiple of 8) giving >=2 grid steps whose double-buffered
    working set (activation/output tiles + resident weight) fits the VMEM budget."""
    budget = 40 * 2**20

    def fits(t):
        return 2 * t * (k + n) * 4 + 2 * k * n * esize <= budget

    for cand in (1024, 512, 256, 128, 64, 32, 16, 8):
        if m % cand == 0 and m // cand >= 2 and fits(cand):
            return cand
    for cand in (1024, 512, 256, 128, 64, 32, 16, 8):
        if m % cand == 0 and fits(cand):
            return cand
    return m


def _compiler_params(semantics, est_vmem_bytes):
    kwargs = {}
    # Only raise the scoped-VMEM cap when the working set exceeds the smallest default
    # (16 MiB on v5e); cap at 48 MiB to keep headroom under v7x's 64 MiB physical VMEM.
    if est_vmem_bytes > 16 * 2**20:
        kwargs["vmem_limit_bytes"] = int(min(2 * est_vmem_bytes, 48 * 2**20))
    return pltpu.CompilerParams(dimension_semantics=semantics, **kwargs)


def _linear(x2d, w, b, *, seed, apply_dropout, compute_dtype, out_dtype, tile_m=None):
    M, K = x2d.shape
    N = w.shape[1]
    has_bias = b is not None
    compute_dtype = jnp.dtype(compute_dtype)
    esize = compute_dtype.itemsize
    if tile_m is None:
        tile_m = _pick_tile_m(M, K, N, esize)
    assert M % tile_m == 0, (M, tile_m)
    grid = (M // tile_m,)

    w_c = w.astype(compute_dtype)                              # halve weight DMA when bf16
    b2d = (b if has_bias else jnp.zeros((N,), jnp.float32)).astype(jnp.float32).reshape(1, N)
    seed_arr = jnp.array([seed], dtype=jnp.int32)

    bytes_acc = int(x2d.size * x2d.dtype.itemsize + w_c.size * w_c.dtype.itemsize
                    + M * N * jnp.dtype(out_dtype).itemsize)
    cost = pl.CostEstimate(flops=2 * M * K * N, transcendentals=0, bytes_accessed=bytes_acc)
    est_vmem = 2 * tile_m * (K + N) * 4 + 2 * K * N * esize
    # TODO(synk): for transformer-scale E on v7x (64 MiB VMEM), add K/N grid axes with a
    # VMEM f32 accumulator (pl.when init/finalize) instead of holding (K, N) resident,
    # and single-buffer the grid-invariant weight block.

    kernel = functools.partial(_linear_kernel, has_bias=has_bias, apply_dropout=apply_dropout,
                               tile_m=tile_m, compute_dtype=compute_dtype)
    return pl.pallas_call(
        kernel,
        out_shape=jax.ShapeDtypeStruct((M, N), out_dtype),
        grid_spec=pltpu.PrefetchScalarGridSpec(
            num_scalar_prefetch=1,                             # dropout seed lives in SMEM
            grid=grid,
            in_specs=[
                pl.BlockSpec((tile_m, K), lambda i, seed_ref: (i, 0)),
                pl.BlockSpec((K, N), lambda i, seed_ref: (0, 0)),
                pl.BlockSpec((1, N), lambda i, seed_ref: (0, 0)),
            ],
            out_specs=pl.BlockSpec((tile_m, N), lambda i, seed_ref: (i, 0)),
        ),
        compiler_params=_compiler_params(("parallel",), est_vmem),
        cost_estimate=cost,
    )(seed_arr, x2d, w_c, b2d)


# --------------------------------------------------------------------------- #
# Causal attention: one batch per grid step, all heads fused, heads re-merged in
# VMEM so the output block is lane-dense (T, E).  T <= BLOCK_SIZE = 128.
# --------------------------------------------------------------------------- #
def _attention_kernel(qkv_ref, o_ref, *, n_heads, scale, compute_dtype):
    qkv = qkv_ref[0]                                           # (T, 3E), compute_dtype
    T = qkv.shape[0]
    E = qkv.shape[1] // 3
    Dh = E // n_heads

    row = jax.lax.broadcasted_iota(jnp.int32, (T, T), 0)
    col = jax.lax.broadcasted_iota(jnp.int32, (T, T), 1)
    causal = col > row                                         # torch.triu(ones, diagonal=1)

    head_outs = []
    for h in range(n_heads):                                   # static unroll over heads
        # Head split done with static in-VMEM slices (no XLA transpose / HBM pass).
        q = qkv[:, h * Dh:(h + 1) * Dh].astype(compute_dtype) * scale   # fold 1/sqrt(Dh) into q
        k = qkv[:, E + h * Dh:E + (h + 1) * Dh].astype(compute_dtype)
        v = qkv[:, 2 * E + h * Dh:2 * E + (h + 1) * Dh].astype(compute_dtype)
        # q @ k^T without materializing a transpose: contract the last axes on the MXU.
        s = jax.lax.dot_general(q, k, (((1,), (1,)), ((), ())),
                                preferred_element_type=jnp.float32)     # (T, T) f32
        s = jnp.where(causal, -jnp.inf, s)
        m = jnp.max(s, axis=-1, keepdims=True)                 # numerically stable softmax (f32)
        p = jnp.exp(s - m)
        l = jnp.sum(p, axis=-1, keepdims=True)
        o = jnp.dot(p.astype(compute_dtype), v, preferred_element_type=jnp.float32)
        # TODO(synk): pl.reciprocal(l, approx=True) would move this divide to the EUP slot;
        # kept as a portable divide so interpret-mode checks also run.
        head_outs.append(o / l)
    # Re-merge heads in VMEM -> single lane-dense (T, E) store, no masked vst / transpose.
    o_ref[0] = jnp.concatenate(head_outs, axis=-1).astype(o_ref.dtype)


def _attention(qkv3d, *, n_heads, scale, compute_dtype, out_dtype):
    B, T, E3 = qkv3d.shape
    E = E3 // 3
    Dh = E // n_heads
    kernel = functools.partial(_attention_kernel, n_heads=n_heads, scale=scale,
                               compute_dtype=jnp.dtype(compute_dtype))
    esize = jnp.dtype(out_dtype).itemsize
    cost = pl.CostEstimate(
        flops=int(B * n_heads * (4 * T * T * Dh + 6 * T * T)),
        transcendentals=int(B * n_heads * T * T),
        bytes_accessed=int(B * T * (E3 + E) * esize))
    est_vmem = 2 * T * (E3 + E) * 4 + n_heads * T * T * 4
    # TODO(synk): if B == 1 on v7x, split T into >=2 query tiles so both TensorCores get work.
    return pl.pallas_call(
        kernel,
        out_shape=jax.ShapeDtypeStruct((B, T, E), out_dtype),
        grid_spec=pltpu.PrefetchScalarGridSpec(
            num_scalar_prefetch=0,
            grid=(B,),
            in_specs=[pl.BlockSpec((1, T, E3), lambda b: (b, 0, 0))],
            out_specs=pl.BlockSpec((1, T, E), lambda b: (b, 0, 0)),
        ),
        compiler_params=_compiler_params(("parallel",), est_vmem),
        cost_estimate=cost,
    )(qkv3d)


# --------------------------------------------------------------------------- #
# Full module forward
# --------------------------------------------------------------------------- #
def multi_head_attention(x, w_qkv, w_proj, b_proj, n_heads, *,
                         seed=0, training=False, compute_dtype=jnp.bfloat16, tile_m=None):
    """x: (B, T, E); w_qkv: (E, 3E) = torch qkv_linear.weight.T (bias-free);
    w_proj: (E, E) = torch proj.weight.T; b_proj: (E,)."""
    B, T, E = x.shape
    assert E % n_heads == 0 and T <= BLOCK_SIZE
    Dh = E // n_heads
    M = B * T
    compute_dtype = jnp.dtype(compute_dtype)

    # 1) fused QKV projection (no bias), row-tiled & software-pipelined.
    qkv = _linear(x.reshape(M, E), w_qkv, None, seed=seed, apply_dropout=False,
                  compute_dtype=compute_dtype, out_dtype=compute_dtype, tile_m=tile_m)

    # 2+3) causal attention with head split/merge fused inside the kernel.
    #      (M, 3E) -> (B, T, 3E) is a metadata-only reshape, no HBM pass.
    attn = _attention(qkv.reshape(B, T, 3 * E), n_heads=n_heads, scale=1.0 / math.sqrt(Dh),
                      compute_dtype=compute_dtype, out_dtype=compute_dtype)

    # 4) output projection (+bias) and dropout; attention output is already (B, T, E)
    #    lane-dense and stays in compute_dtype, so the activation DMA is half-width.
    out2d = _linear(attn.reshape(M, E), w_proj, b_proj, seed=seed, apply_dropout=training,
                    compute_dtype=compute_dtype, out_dtype=x.dtype, tile_m=tile_m)
    return out2d.reshape(B, T, E)


# --------------------------------------------------------------------------- #
# Reference + demo
# --------------------------------------------------------------------------- #
def _reference_mha(x, w_qkv, w_proj, b_proj, n_heads):
    B, T, E = x.shape
    Dh = E // n_heads
    hp = jax.lax.Precision.HIGHEST
    qkv = jnp.dot(x.reshape(B * T, E), w_qkv, precision=hp)
    q, k, v = jnp.split(qkv, 3, axis=-1)

    def heads(z):
        return z.reshape(B, T, n_heads, Dh).transpose(0, 2, 1, 3)

    q, k, v = heads(q), heads(k), heads(v)
    wei = jnp.einsum("bhtd,bhsd->bhts", q, k, precision=hp)
    mask = jnp.triu(jnp.ones((T, T), dtype=bool), k=1)
    wei = jnp.where(mask, -jnp.inf, wei)
    wei = jax.nn.softmax(wei / math.sqrt(Dh), axis=-1)
    out = jnp.einsum("bhts,bhsd->bhtd", wei, v, precision=hp)
    out = out.transpose(0, 2, 1, 3).reshape(B * T, E)
    return (jnp.dot(out, w_proj, precision=hp) + b_proj).reshape(B, T, E)


if __name__ == "__main__":
    B, T, E, n_heads = 2, 128, 128, 4           # T = BLOCK_SIZE, E lane-dense (x128)
    key = jax.random.PRNGKey(0)
    kx, kq, kp, kb = jax.random.split(key, 4)
    x = jax.random.normal(kx, (B, T, E), dtype=jnp.float32)
    bound = 1.0 / math.sqrt(E)                  # torch Linear init: U(-1/sqrt(fan_in), ...)
    w_qkv = jax.random.uniform(kq, (E, 3 * E), jnp.float32, -bound, bound)
    w_proj = jax.random.uniform(kp, (E, E), jnp.float32, -bound, bound)
    b_proj = jax.random.uniform(kb, (E,), jnp.float32, -bound, bound)

    ref = _reference_mha(x, w_qkv, w_proj, b_proj, n_heads)

    # f32-MXU path: tight check against the pure-JAX reference.
    out_f32 = jax.block_until_ready(
        multi_head_attention(x, w_qkv, w_proj, b_proj, n_heads, compute_dtype=jnp.float32))
    assert out_f32.shape == (B, T, E)
    assert jnp.allclose(out_f32, ref, atol=1e-3, rtol=1e-3), \
        float(jnp.max(jnp.abs(out_f32 - ref)))

    # Default bf16-MXU path (f32 accumulate): looser tolerance.
    out_bf16 = jax.block_until_ready(
        multi_head_attention(x, w_qkv, w_proj, b_proj, n_heads))
    assert jnp.allclose(out_bf16, ref, atol=3e-2, rtol=3e-2), \
        float(jnp.max(jnp.abs(out_bf16 - ref)))

    # Training-mode smoke test (dropout active, p = 0.2).
    out_train = jax.block_until_ready(
        multi_head_attention(x, w_qkv, w_proj, b_proj, n_heads, training=True, seed=123))
    assert jnp.isfinite(out_train).all()
    drop_frac = float(jnp.mean((out_train == 0.0).astype(jnp.float32)))
    assert 0.1 < drop_frac < 0.3, drop_frac

    print("KERNEL_OK")
</pallas_src>

<mosaic_0001>
module attributes {stable_mosaic.version = 11 : i64} {
  func.func @_linear_kernel(%arg0: i32, %arg1: memref<1xi32, #tpu.memory_space<smem>>, %arg2: memref<128x128xf32, #tpu.memory_space<vmem>>, %arg3: memref<128x384xf32, #tpu.memory_space<vmem>>, %arg4: memref<1x384xf32, #tpu.memory_space<vmem>>, %arg5: memref<128x384xf32, #tpu.memory_space<vmem>>) attributes {dimension_semantics = [#tpu.dimension_semantics<parallel>], iteration_bounds = array<i64: 2>, scalar_prefetch = 1 : i64, scratch_operands = 0 : i64, tpu.core_type = #tpu.core_type<tc>, window_params = [{transform_indices = @transform_0, window_bounds = array<i64: 128, 128>}, {pipeline_mode = #tpu.pipeline_mode<synchronous>, transform_indices = @transform_1, window_bounds = array<i64: 128, 384>}, {pipeline_mode = #tpu.pipeline_mode<synchronous>, transform_indices = @transform_2, window_bounds = array<i64: 1, 384>}, {transform_indices = @transform_3, window_bounds = array<i64: 128, 384>}]} {
    %c0 = arith.constant 0 : index
    %c0_0 = arith.constant 0 : index
    %0 = vector.load %arg2[%c0, %c0_0] : memref<128x128xf32, #tpu.memory_space<vmem>>, vector<128x128xf32>
    %c0_1 = arith.constant 0 : index
    %c0_2 = arith.constant 0 : index
    %1 = vector.load %arg3[%c0_1, %c0_2] : memref<128x384xf32, #tpu.memory_space<vmem>>, vector<128x384xf32>
    %cst = arith.constant dense<0.000000e+00> : vector<128x384xf32>
    %2 = tpu.matmul %0, %1, %cst {dimension_numbers = #tpu.dot_dimension_numbers<[1], [0], [0], [1], [0, 0, 1, 1], [], []>} : vector<128x128xf32>, vector<128x384xf32>, vector<128x384xf32> -> vector<128x384xf32>
    %c0_3 = arith.constant 0 : index
    %c0_4 = arith.constant 0 : index
    %3 = vector.load %arg5[%c0_3, %c0_4] : memref<128x384xf32, #tpu.memory_space<vmem>>, vector<128x384xf32>
    tpu.vector_store %arg5[%c0_3, %c0_4], %2 {strides = array<i32>} : memref<128x384xf32, #tpu.memory_space<vmem>>, vector<128x384xf32>,
    return
  }
  func.func @transform_0(%arg0: i32, %arg1: memref<1xi32, #tpu.memory_space<smem>>) -> (i32, i32) {
    %c0_i32 = arith.constant 0 : i32
    %c0_i32_0 = arith.constant 0 : i32
    return %arg0, %c0_i32 : i32, i32
  }
  func.func @transform_1(%arg0: i32, %arg1: memref<1xi32, #tpu.memory_space<smem>>) -> (i32, i32) {
    %c0_i32 = arith.constant 0 : i32
    %c0_i32_0 = arith.constant 0 : i32
    %c0_i32_1 = arith.constant 0 : i32
    return %c0_i32, %c0_i32_0 : i32, i32
  }
  func.func @transform_2(%arg0: i32, %arg1: memref<1xi32, #tpu.memory_space<smem>>) -> (i32, i32) {
    %c0_i32 = arith.constant 0 : i32
    %c0_i32_0 = arith.constant 0 : i32
    %c0_i32_1 = arith.constant 0 : i32
    return %c0_i32, %c0_i32_0 : i32, i32
  }
  func.func @transform_3(%arg0: i32, %arg1: memref<1xi32, #tpu.memory_space<smem>>) -> (i32, i32) {
    %c0_i32 = arith.constant 0 : i32
    %c0_i32_0 = arith.constant 0 : i32
    return %arg0, %c0_i32 : i32, i32
  }
}

</mosaic_0001>

<bundles_post_ra>
// kernel: tpu_custom_call.1
= control target key start
LH: loop header
LB: loop body
LE: loop exit
PB: predicated region body
PF: predicated region fallthrough
CT: control target
= control target key end

     0   :  { %10 = vsyncpa [#allocation5], 0  ;;  %s1414_s0 = inlined_call_operand.<no memory space> [shape: s32[1], index: 0, kind: input, shape index: {}]   ;;  %s1415_s1 = inlined_call_operand.hbm [shape: f32[256,128], index: 1, kind: input, shape index: {}]   ;;  %s1416_s2 = inlined_call_operand.hbm [shape: f32[128,384], index: 2, kind: input, shape index: {}]   ;;  %s1417_s3 = inlined_call_operand.vmem [shape: f32[1,384], index: 3, kind: input, shape index: {}]   ;;  %s1418_s4 = inlined_call_operand.hbm [shape: f32[256,384], index: 4, kind: output, shape index: {}]  }
   0x1   :  { %12 = vsyncpa [#allocation5 + $0x1], 0 }
   0x2   :  { %13 = vsyncpa [#allocation8], 0 }
   0x3   :  { %14 = vsyncpa [#allocation6], 0 }
   0x4   :  { %16 = vsyncpa [#allocation6 + $0x1], 0  ;;  %s1123_s15 = smov 0   ;;  %s1125_s0 = smov 0  }
   0x5   :  { %s1127_s16 = smov 0   ;;  %s1129_s17 = smov 0  }
   0x6 LB: > { %s1144_s3 = sadd.s32 4294967295, %s1086_s17   ;;  %s724_s18 = sadd.s32 4294967294, %s1086_s17   ;;  %s1086_s17 = sphi %s1129_s17, %s1438_s17   ;;  %s1082_s16 = sphi %s1127_s16, %s1437_s16   ;;  %s1078_s0 = sphi %s1125_s0, %s1436_s0   ;;  %s1074_s15 = sphi %s1123_s15, %s1435_s15  }
   0x7   : > { %p42_p0 = scmp.ne.s32.totalorder %s1078_s0, %s1074_s15  ;;  %p1419_p1 = scmp.eq.s32.totalorder %s1144_s3, 0 }
   0x8   : > { %p114_p3 = scmp.eq.s32.totalorder %s724_s18, 1  ;;  %p725_p5 = scmp.ge.s32.totalorder %s1086_s17, 1 }
   0x9   : > { %p1153_p4 = por %p1419_p1, %p42_p0  ;;  %p121_p7 = scmp.lt.s32.totalorder %s1086_s17, 3 }
   0xa   : > { %p1158_p6 = por %p114_p3, %p42_p0  ;;  %s1088_s22 = smov [#allocation7]  }
   0xb   : > { %s1422_s19 = scalar_select %p1153_p4, 1, 0 }
   0xc   : > { %s1423_s20 = scalar_select %p1158_p6, 1, 0 }
   0xd   : > { %p1163_p8 = pnand %p725_p5, %p121_p7  ;;  %s133_s23 = sshll.u32 %s1088_s22, 4  ;;  %s1167_s23 = int_to_ptr.vmem [resolvable:$true] %s133_s23 }
   0xe   : > { %s1179_s25 = sadd.s32 1, %s1086_s17   ;;  %s29_s26 = sadd.s32 1, %s1082_s16 }
   0xf   : > { %s1424_s21 = scalar_select %p1163_p8, 1, 0 }
  0x10   : > { %p902_p9 = pneg %p1163_p8  ;;  %s26_s27 = ssub.s32 %s1086_s17, %s1179_s25 }
  0x11   : > { %s958_s30 = scalar_lea.hbm %s1416_s2, 6144 }
  0x12   : > { %p1174_p11 = pnand %p902_p9, %p1419_p1  ;;  %p959_p12 = scmp.ne.s32.totalorder %s1416_s2, %s958_s30 }
  0x13   : > { %p965_p5 = scmp.lt.u32.totalorder %s958_s30, %s1416_s2 }
  0x14   : > { %p960_p13 = pneg %p1174_p11 }
  0x16   : > { %p961_p0 = pnand %p960_p13, %p959_p12 }
  0x18   : > { %p962_p3 = pneg %p961_p0 }
  0x1a   : > { %p967_p7 = pnand %p965_p5, %p962_p3 }
  0x1c   : > { %970 = shalt.err (!%p967_p7)
}
  0x1d   : > { %s971_s9 = scalar_lea.vmem %s1167_s23, 6144  ;;  %p979_p2 = scmp.lt.s32.totalorder %s1167_s23, %s1167_s23 }
  0x1e   : > { %p972_p9 = scmp.ne.s32.totalorder %s1167_s23, %s971_s9  ;;  %p980_p6 = scmp.lt.s32.totalorder %s971_s9, %s971_s9 }
  0x20   : > { %p974_p10 = pnand %p972_p9, %p960_p13  ;;  %p981_p4 = por %p980_p6, %p979_p2 }
  0x22   : > { %p975_p1 = pneg %p974_p10 }
  0x24   : > { %p982_p8 = pnand %p981_p4, %p975_p1 }
  0x26   : > { %985 = shalt.err (!%p982_p8)
}
  0x27   : > { %s1089_s10 = smov 384   ;;  %s1090_s11 = smov 24  }
  0x28   : > { %905 = dma.hbm_to_vmem [thread:$0]  (!%p1174_p11), %s1416_s2, 6144, %s1167_s23, [#allocation8], %s1089_s10, %s1089_s10, %s1090_s11  }
  0x29   : > { %p27_p2 = scmp.eq.s32.totalorder %s26_s27, 0  ;;  %p36_p1 = scmp.ne.s32.totalorder %s1082_s16, %s1078_s0 }
  0x2a   : > { %p37_p4 = scmp.eq.s32.totalorder %s1086_s17, 0  ;;  %p915_p6 = scmp.lt.s32.totalorder %s1086_s17, 2 }
  0x2b   : > { %s1210_s14 = scalar_select %p27_p2, %s1082_s16, %s29_s26  }
  0x2c   : > { %p38_p8 = por %p37_p4, %p36_p1  ;;  %p1426_p10 = scmp.eq.s32.totalorder %s1144_s3, 1 }
  0x2d   : > { %s150_s22 = sand.u32 1, %s1082_s16   ;;  %s739_s28 = sshll.u32 %s1086_s17, 11 }
  0x2e   : > { %p1214_p12 = por %p1426_p10, %p36_p1  ;;  %s728_s29 = sshll.u32 %s150_s22, 7 }
  0x2f   : > { %s1223_s5 = scalar_lea.hbm %s1415_s1, %s739_s28  ;;  %s154_s23 = scalar_lea.vmem [#allocation4], %s728_s29 }
  0x30   : > { %s161_s26 = sshll.u32 %s154_s23, 4  ;;  %p1225_p11 = pnand %p915_p6, %p38_p8  ;;  %s1229_s26 = int_to_ptr.vmem [resolvable:$true] %s161_s26 }
  0x31   : > { %s1231_s6 = scalar_lea.sflag [#allocation5], %s150_s22  ;;  %s986_s7 = scalar_lea.hbm %s1223_s5, 2048 }
  0x32   : > { %p987_p13 = scmp.ne.s32.totalorder %s1223_s5, %s986_s7  ;;  %p988_p0 = pneg %p1225_p11 }
  0x33   : > { %s991_s10 = scalar_lea.hbm %s1415_s1, 4096  ;;  %p992_p7 = scmp.lt.u32.totalorder %s1223_s5, %s1415_s1 }
  0x34   : > { %p989_p3 = pnand %p988_p0, %p987_p13  ;;  %p993_p9 = scmp.lt.u32.totalorder %s991_s10, %s986_s7 }
  0x35   : > { %p995_p1 = scmp.lt.u32.totalorder %s986_s7, %s1223_s5 }
  0x36   : > { %p990_p5 = pneg %p989_p3  ;;  %p994_p2 = por %p993_p9, %p992_p7 }
  0x38   : > { %p996_p4 = por %p995_p1, %p994_p2 }
  0x3a   : > { %p997_p6 = pnand %p996_p4, %p990_p5 }
  0x3c   : > { %1000 = shalt.err (!%p997_p6)
}
  0x3d   : > { %s1001_s13 = scalar_lea.vmem %s1229_s26, 2048  ;;  %s1091_s22 = smov [#allocation4]  }
  0x3e   : > { %p1002_p8 = scmp.ne.s32.totalorder %s1229_s26, %s1001_s13  ;;  %s1006_s28 = sshll.u32 %s1091_s22, 4  ;;  %s1007_s28 = int_to_ptr.vmem [resolvable:$false] %s1006_s28 }
  0x3f   : > { %s1008_s29 = scalar_lea.vmem %s1007_s28, 4096  ;;  %p1009_p3 = scmp.lt.s32.totalorder %s1229_s26, %s1007_s28 }
  0x40   : > { %p1004_p10 = pnand %p1002_p8, %p988_p0  ;;  %p1010_p7 = scmp.lt.s32.totalorder %s1008_s29, %s1001_s13 }
  0x42   : > { %p1005_p13 = pneg %p1004_p10  ;;  %p1011_p9 = por %p1010_p7, %p1009_p3 }
  0x44   : > { %p1012_p2 = pnand %p1011_p9, %p1005_p13 }
  0x46   : > { %1015 = shalt.err (!%p1012_p2)
}
  0x47   : > { %s1092_s24 = smov 128   ;;  %s1093_s30 = smov 8  }
  0x48   : > { %909 = dma.hbm_to_vmem [thread:$0]  (!%p1225_p11), %s1223_s5, 2048, %s1229_s26, %s1231_s6, %s1092_s24, %s1092_s24, %s1093_s30  }
  0x49   : > { %p1429_p0 = scmp.ne.s32.totalorder %s1424_s21, 0 }
  0x4a   : > { %s1262_s23 = sand.u32 (!%p1429_p0), 1, %s1078_s0   ;;  %p1430_p5 = scmp.ne.s32.totalorder (!%p1429_p0), %s1422_s19, 0 }
  0x4b   : > { %173 = sbr.rel (%p1429_p0) target bundleno = 409 (0x199), region = 32  ;;  %s732_s7 = sshll.u32 (!%p1429_p0), %s1262_s23, 7 }
  0x4c   : > { %s176_s8 = scalar_lea.sflag (!%p1429_p0), [#allocation5], %s1262_s23  ;;  %s1266_s9 = scalar_lea.vmem (!%p1429_p0), [#allocation4], %s732_s7 }
  0x52   : > { %1061 = dma.done.wait (%p1430_p5), %s176_s8, 2048  }
  0x53   : > { %1063 = vsyncadd (%p1430_p5), %s176_s8, 4294965248  ;;  %p1431_p11 = scmp.eq.s32.totalorder %s1144_s3, 0 }
  0x55   : > { %1065 = dma.done.wait (%p1431_p11), [#allocation8], 6144   ;;  %p1432_p1 = pmov %p1431_p11 }
  0x56   : > { %v1094_v0 = vmov 0.0   ;;  %v225_v1 = vld [vmem:[#allocation7 + $0x8] sm:$0xff]  ;;  %v228_v2 = vld [vmem:[#allocation7 + $0x20] sm:$0xff]  ;;  %v227_v5 = vld [vmem:[#allocation7 + $0x18] sm:$0xff]  ;;  %s892_s19 = smul.u32 384, %s1262_s23  ;;  %s1095_s12 = smov [#allocation9]  }
  0x57   : > { %1067 = vsyncadd (%p1432_p1), [#allocation8], 4294961152  ;;  %336 = vmatprep.mubr.f32.mxu0 %v1094_v0  ;;  %v224_v3 = vld [vmem:[#allocation7] sm:$0xff]  ;;  %v828_v4 = vpack.c.bf16 %v228_v2, %v225_v1  ;;  %v231_v6 = vld [vmem:[#allocation7 + $0x38] sm:$0xff]  ;;  %s893_s5 = smul.u32 6144, %s1144_s3  ;;  %s627_s3 = scalar_lea.sflag [#allocation6], %s1262_s23 }
  0x58   : > { %v234_v7 = vld [vmem:[#allocation7 + $0x50] sm:$0xff]  ;;  %v830_v8 = vpack.c.bf16 %v227_v5, %v224_v3  ;;  %v233_v11 = vld [vmem:[#allocation7 + $0x48] sm:$0xff]  ;;  %v240_v13 = vld [vmem:[#allocation7 + $0x80] sm:$0xff]  ;;  %s1313_s21 = scalar_lea.vmem [#allocation9], %s892_s19  ;;  %s1020_s13 = sshll.u32 %s1095_s12, 4  ;;  %s1021_s13 = int_to_ptr.vmem [resolvable:$false] %s1020_s13 }
  0x59   : > { %v832_v9 = vpack.c.bf16 %v234_v7, %v231_v6  ;;  %v230_v10 = vld [vmem:[#allocation7 + $0x30] sm:$0xff]  ;;  %v237_v12 = vld [vmem:[#allocation7 + $0x68] sm:$0xff]  ;;  %829 = vmatprep.subr.bf16.mxu0 %v828_v4  ;;  %v236_v16 = vld [vmem:[#allocation7 + $0x60] sm:$0xff]  ;;  %s641_s26 = sshll.u32 %s1313_s21, 4  ;;  %s1366_s10 = scalar_lea.hbm %s1418_s4, %s893_s5  ;;  %s1368_s26 = int_to_ptr.vmem [resolvable:$true] %s641_s26 }
  0x5a   : > { %831 = vmatpush1.bf16.msra.mxu0 %v830_v8  ;;  %v834_v14 = vpack.c.bf16 %v233_v11, %v230_v10  ;;  %v836_v15 = vpack.c.bf16 %v240_v13, %v237_v12  ;;  %v239_v17 = vld [vmem:[#allocation7 + $0x78] sm:$0xff]  ;;  %v246_v19 = vld [vmem:[#allocation7 + $0xb0] sm:$0xff]  ;;  %v245_v23 = vld [vmem:[#allocation7 + $0xa8] sm:$0xff]  ;;  %s1016_s11 = scalar_lea.vmem %s1368_s26, 6144  ;;  %s1022_s22 = scalar_lea.vmem %s1021_s13, 12288 }
  0x5b   : > { %833 = vmatprep.subr.bf16.mxu0 %v832_v9  ;;  %v243_v18 = vld [vmem:[#allocation7 + $0x98] sm:$0xff]  ;;  %v838_v20 = vpack.c.bf16 %v239_v17, %v236_v16  ;;  %v242_v22 = vld [vmem:[#allocation7 + $0x90] sm:$0xff]  ;;  %v249_v24 = vld [vmem:[#allocation7 + $0xc8] sm:$0xff]  ;;  %p1017_p4 = scmp.ne.s32.totalorder %s1368_s26, %s1016_s11  ;;  %p1023_p10 = scmp.lt.s32.totalorder %s1368_s26, %s1021_s13 }
  0x5c   : > { %v840_v21 = vpack.c.bf16 %v246_v19, %v243_v18  ;;  %v252_v25 = vld [vmem:[#allocation7 + $0xe0] sm:$0xff]  ;;  %v226_v26 = vld [vmem:[#allocation7 + $0x10] sm:$0xff]  ;;  %v229_v27 = vld [vmem:[#allocation7 + $0x28] sm:$0xff]  ;;  %v842_v30 = vpack.c.bf16 %v245_v23, %v242_v22  ;;  %p1024_p13 = scmp.lt.s32.totalorder %s1022_s22, %s1016_s11 }
  0x5d   : > { %v1278_v28 = vld [vmem:[%s1266_s9] sm:$0xff]  ;;  %v860_v32 = vpack.c.bf16 %v229_v27, %v226_v26  ;;  %v235_v33 = vld [vmem:[#allocation7 + $0x58] sm:$0xff]  ;;  %v844_v34 = vpack.c.bf16 %v252_v25, %v249_v24  ;;  %v238_v37 = vld [vmem:[#allocation7 + $0x70] sm:$0xff]  ;;  %p1018_p6 = pnand %p1017_p4, %p1214_p12 }
  0x5e   : > { %835 = vmatpush1.bf16.msra.mxu0 %v834_v14  ;;  %v232_v29 = vld [vmem:[#allocation7 + $0x40] sm:$0xff]  ;;  %804 = vmatprep.mubr.f32.mxu1 %v1278_v28  ;;  %v251_v35 = vld [vmem:[#allocation7 + $0xd8] sm:$0xff]  ;;  %v241_v38 = vld [vmem:[#allocation7 + $0x88] sm:$0xff]  ;;  %p1025_p3 = por %p1024_p13, %p1023_p10 }
  0x5f   : > { %837 = vmatprep.subr.bf16.mxu0 %v836_v15  ;;  %v248_v31 = vld [vmem:[#allocation7 + $0xc0] sm:$0xff]  ;;  %v864_v36 = vpack.c.bf16 %v235_v33, %v232_v29  ;;  %v255_v39 = vld [vmem:[#allocation7 + $0xf8] sm:$0xff]  ;;  %v258_v40 = vld [vmem:[#allocation7 + $0x110] sm:$0xff]  ;;  %861 = vmatprep.subr.bf16.mxu1 %v860_v32  ;;  %v868_v43 = vpack.c.bf16 %v241_v38, %v238_v37  ;;  %p1019_p8 = pneg %p1018_p6 }
  0x60   : > { %863 = vmatpush3.bf16.msra.mxu1 %v860_v32  ;;  %v846_v41 = vpack.c.bf16 %v251_v35, %v248_v31  ;;  %v254_v42 = vld [vmem:[#allocation7 + $0xf0] sm:$0xff]  ;;  %v848_v44 = vpack.c.bf16 %v258_v40, %v255_v39  ;;  %v257_v45 = vld [vmem:[#allocation7 + $0x108] sm:$0xff]  ;;  %v244_v46 = vld [vmem:[#allocation7 + $0xa0] sm:$0xff] }
  0x61   : > { %865 = vmatprep.subr.bf16.mxu1 %v864_v36  ;;  %v247_v47 = vld [vmem:[#allocation7 + $0xb8] sm:$0xff]  ;;  %v261_v48 = vld [vmem:[#allocation7 + $0x128] sm:$0xff]  ;;  %v264_v49 = vld [vmem:[#allocation7 + $0x140] sm:$0xff]  ;;  %v850_v50 = vpack.c.bf16 %v257_v45, %v254_v42  ;;  %p1026_p7 = pnand %p1025_p3, %p1019_p8 }
  0x62   : > { %839 = vmatpush1.bf16.msra.mxu0 %v838_v20  ;;  %v260_v51 = vld [vmem:[#allocation7 + $0x120] sm:$0xff]  ;;  %v872_v52 = vpack.c.bf16 %v247_v47, %v244_v46  ;;  %v852_v53 = vpack.c.bf16 %v264_v49, %v261_v48  ;;  %v263_v54 = vld [vmem:[#allocation7 + $0x138] sm:$0xff]  ;;  %v250_v55 = vld [vmem:[#allocation7 + $0xd0] sm:$0xff] }
  0x63   : > { %841 = vmatprep.subr.bf16.mxu0 %v840_v21  ;;  %v253_v56 = vld [vmem:[#allocation7 + $0xe8] sm:$0xff]  ;;  %v267_v57 = vld [vmem:[#allocation7 + $0x158] sm:$0xff]  ;;  %v270_v58 = vld [vmem:[#allocation7 + $0x170] sm:$0xff]  ;;  %v854_v59 = vpack.c.bf16 %v263_v54, %v260_v51 }
  0x64   : > { %867 = vmatpush3.bf16.msra.mxu1 %v864_v36  ;;  %v266_v60 = vld [vmem:[#allocation7 + $0x150] sm:$0xff]  ;;  %v876_v61 = vpack.c.bf16 %v253_v56, %v250_v55  ;;  %v856_v62 = vpack.c.bf16 %v270_v58, %v267_v57  ;;  %v269_v63 = vld [vmem:[#allocation7 + $0x168] sm:$0xff]  ;;  %v256_v1 = vld [vmem:[#allocation7 + $0x100] sm:$0xff] }
  0x65   : > { %869 = vmatprep.subr.bf16.mxu1 %v868_v43  ;;  %v259_v2 = vld [vmem:[#allocation7 + $0x118] sm:$0xff]  ;;  %v858_v3 = vpack.c.bf16 %v269_v63, %v266_v60  ;;  %v262_v5 = vld [vmem:[#allocation7 + $0x130] sm:$0xff]  ;;  %v265_v6 = vld [vmem:[#allocation7 + $0x148] sm:$0xff] }
  0x66   : > { %843 = vmatpush1.bf16.msra.mxu0 %v842_v30  ;;  %v880_v4 = vpack.c.bf16 %v259_v2, %v256_v1  ;;  %v884_v7 = vpack.c.bf16 %v265_v6, %v262_v5  ;;  %v268_v8 = vld [vmem:[#allocation7 + $0x160] sm:$0xff]  ;;  %v271_v9 = vld [vmem:[#allocation7 + $0x178] sm:$0xff]  ;;  %v209_v10 = vld [vmem:[%s1266_s9 + $0x8] sm:$0xff] }
  0x67   : > { %845 = vmatprep.subr.bf16.mxu0 %v844_v34  ;;  %v888_v11 = vpack.c.bf16 %v271_v9, %v268_v8  ;;  %v210_v12 = vld [vmem:[%s1266_s9 + $0x10] sm:$0xff]  ;;  %v211_v13 = vld [vmem:[%s1266_s9 + $0x18] sm:$0xff]  ;;  %v212_v14 = vld [vmem:[%s1266_s9 + $0x20] sm:$0xff] }
  0x68   : > { %871 = vmatpush3.bf16.msra.mxu1 %v868_v43  ;;  %v213_v15 = vld [vmem:[%s1266_s9 + $0x28] sm:$0xff]  ;;  %v214_v16 = vld [vmem:[%s1266_s9 + $0x30] sm:$0xff]  ;;  %v215_v17 = vld [vmem:[%s1266_s9 + $0x38] sm:$0xff] }
  0x69   : > { %873 = vmatprep.subr.bf16.mxu1 %v872_v52  ;;  %v216_v18 = vld [vmem:[%s1266_s9 + $0x40] sm:$0xff]  ;;  %v217_v19 = vld [vmem:[%s1266_s9 + $0x48] sm:$0xff]  ;;  %v218_v20 = vld [vmem:[%s1266_s9 + $0x50] sm:$0xff] }
  0x6a   : > { %847 = vmatpush1.bf16.msra.mxu0 %v846_v41  ;;  %v219_v21 = vld [vmem:[%s1266_s9 + $0x58] sm:$0xff]  ;;  %v220_v22 = vld [vmem:[%s1266_s9 + $0x60] sm:$0xff]  ;;  %v221_v23 = vld [vmem:[%s1266_s9 + $0x68] sm:$0xff] }
  0x6b   : > { %849 = vmatprep.subr.bf16.mxu0 %v848_v44  ;;  %v222_v24 = vld [vmem:[%s1266_s9 + $0x70] sm:$0xff]  ;;  %v223_v25 = vld [vmem:[%s1266_s9 + $0x78] sm:$0xff] }
  0x6c   : > { %875 = vmatpush3.bf16.msra.mxu1 %v872_v52 }
  0x6d   : > { %877 = vmatprep.subr.bf16.mxu1 %v876_v61 }
  0x6e   : > { %851 = vmatpush1.bf16.msra.mxu0 %v850_v50 }
  0x6f   : > { %853 = vmatprep.subr.bf16.mxu0 %v852_v53 }
  0x70   : > { %879 = vmatpush3.bf16.msra.mxu1 %v876_v61 }
  0x71   : > { %881 = vmatprep.subr.bf16.mxu1 %v880_v4 }
  0x72   : > { %855 = vmatpush1.bf16.msra.mxu0 %v854_v59 }
  0x73   : > { %857 = vmatprep.subr.bf16.mxu0 %v856_v62 }
  0x74   : > { %883 = vmatpush3.bf16.msra.mxu1 %v880_v4 }
  0x75   : > { %885 = vmatprep.subr.bf16.mxu1 %v884_v7 }
  0x76   : > { %859 = vmatpush1.bf16.msra.mxu0 %v858_v3 }
  0x78   : > { %887 = vmatpush3.bf16.msra.mxu1 %v884_v7 }
  0x79   : > { %337 = vmatmul.mubr.f32.vlgmr.msra.gmra.mrb[0].mxu0 %v1278_v28  ;;  %889 = vmatprep.subr.bf16.mxu1 %v888_v11 }
  0x7a   : > { %342 = vmatprep.mubr.f32.mxu0 %v1094_v0 }
  0x7c   : > { %891 = vmatpush3.bf16.msra.mxu1 %v888_v11 }
  0x7d   : > { %343 = vmatmul.mubr.f32.gmra.mrb[2].mxu0 %v209_v10 }
  0x7e   : > { %348 = vmatprep.mubr.f32.mxu0 %v1094_v0 }
  0x7f   : > { %805 = vmatmul.mubr.f32.vlgmr.msra.gmra.mrb[0].mxu1 %v209_v10 }
  0x80   : > { %807 = vmatprep.mubr.f32.mxu1 %v210_v12 }
  0x81   : > { %349 = vmatmul.mubr.f32.gmra.mrb[4].mxu0 %v210_v12 }
  0x82   : > { %354 = vmatprep.mubr.f32.mxu0 %v1094_v0 }
  0x83   : > { %808 = vmatmul.mubr.f32.gmra.mrb[2].mxu1 %v211_v13 }
  0x84   : > { %810 = vmatprep.mubr.f32.mxu1 %v212_v14 }
  0x85   : > { %355 = vmatmul.mubr.f32.gmra.mrb[6].mxu0 %v211_v13 }
  0x86   : > { %360 = vmatprep.mubr.f32.mxu0 %v1094_v0 }
  0x87   : > { %811 = vmatmul.mubr.f32.gmra.mrb[4].mxu1 %v213_v15 }
  0x88   : > { %813 = vmatprep.mubr.f32.mxu1 %v214_v16 }
  0x89   : > { %361 = vmatmul.mubr.f32.gmra.mrb[8].mxu0 %v212_v14 }
  0x8a   : > { %366 = vmatprep.mubr.f32.mxu0 %v1094_v0 }
  0x8b   : > { %814 = vmatmul.mubr.f32.gmra.mrb[6].mxu1 %v215_v17 }
  0x8c   : > { %816 = vmatprep.mubr.f32.mxu1 %v216_v18 }
  0x8d   : > { %367 = vmatmul.mubr.f32.gmra.mrb[10].mxu0 %v213_v15 }
  0x8e   : > { %372 = vmatprep.mubr.f32.mxu0 %v1094_v0 }
  0x8f   : > { %817 = vmatmul.mubr.f32.gmra.mrb[8].mxu1 %v217_v19 }
  0x90   : > { %819 = vmatprep.mubr.f32.mxu1 %v218_v20 }
  0x91   : > { %373 = vmatmul.mubr.f32.gmra.mrb[12].mxu0 %v214_v16 }
  0x92   : > { %378 = vmatprep.mubr.f32.mxu0 %v1094_v0 }
  0x93   : > { %820 = vmatmul.mubr.f32.gmra.mrb[10].mxu1 %v219_v21 }
  0x94   : > { %822 = vmatprep.mubr.f32.mxu1 %v220_v22 }
  0x95   : > { %379 = vmatmul.mubr.f32.gmra.mrb[14].mxu0 %v215_v17 }
  0x96   : > { %384 = vmatprep.mubr.f32.mxu0 %v1094_v0 }
  0x97   : > { %823 = vmatmul.mubr.f32.gmra.mrb[12].mxu1 %v221_v23 }
  0x98   : > { %825 = vmatprep.mubr.f32.mxu1 %v222_v24 }
  0x99   : > { %385 = vmatmul.mubr.f32.gmra.mrb[16].mxu0 %v216_v18 }
  0x9a   : > { %390 = vmatprep.mubr.f32.mxu0 %v1094_v0 }
  0x9b   : > { %826 = vmatmul.mubr.f32.gmra.mrb[14].mxu1 %v223_v25 }
  0x9d   : > { %391 = vmatmul.mubr.f32.gmra.mrb[18].mxu0 %v217_v19 }
  0x9e   : > { %396 = vmatprep.mubr.f32.mxu0 %v1094_v0 }
  0xa1   : > { %397 = vmatmul.mubr.f32.gmra.mrb[20].mxu0 %v218_v20 }
  0xa2   : > { %402 = vmatprep.mubr.f32.mxu0 %v1094_v0 }
  0xa5   : > { %403 = vmatmul.mubr.f32.gmra.mrb[22].mxu0 %v219_v21 }
  0xa6   : > { %408 = vmatprep.mubr.f32.mxu0 %v1094_v0 }
  0xa9   : > { %409 = vmatmul.mubr.f32.gmra.mrb[24].mxu0 %v220_v22 }
  0xaa   : > { %414 = vmatprep.mubr.f32.mxu0 %v1094_v0 }
  0xad   : > { %415 = vmatmul.mubr.f32.gmra.mrb[26].mxu0 %v221_v23 }
  0xae   : > { %420 = vmatprep.mubr.f32.mxu0 %v1094_v0 }
  0xb1   : > { %421 = vmatmul.mubr.f32.gmra.mrb[28].mxu0 %v222_v24 }
  0xb2   : > { %426 = vmatprep.mubr.f32.mxu0 %v1094_v0 }
  0xb5   : > { %427 = vmatmul.mubr.f32.gmra.mrb[30].mxu0 %v223_v25 }
 0x14c   : > { %v338_v26 = vpop.f32.mrb[0].mxu0 }
 0x14d   : > { %578 = vst [vmem:[%s1313_s21] sm:$0xff] %v338_v26  ;;  %v340_v27 = vpop.f32.mrb[1].mxu0 }
 0x14e   : > { %579 = vst [vmem:[%s1313_s21 + $0x8] sm:$0xff] %v340_v27 }
 0x150   : > { %v344_v28 = vpop.f32.mrb[2].mxu0 }
 0x151   : > { %581 = vst [vmem:[%s1313_s21 + $0x18] sm:$0xff] %v344_v28  ;;  %v346_v0 = vpop.f32.mrb[3].mxu0 }
 0x152   : > { %582 = vst [vmem:[%s1313_s21 + $0x20] sm:$0xff] %v346_v0  ;;  %v806_v31 = vpop.f32.mrb[0].mxu1 }
 0x153   : > { %583 = vst [vmem:[%s1313_s21 + $0x28] sm:$0xff] %v806_v31  ;;  %v499_v33 = vpop.f32.mrb[1].mxu1 }
 0x154   : > { %v350_v29 = vpop.f32.mrb[4].mxu0  ;;  %580 = vst [vmem:[%s1313_s21 + $0x10] sm:$0xff] %v499_v33 }
 0x155   : > { %584 = vst [vmem:[%s1313_s21 + $0x30] sm:$0xff] %v350_v29  ;;  %v352_v30 = vpop.f32.mrb[5].mxu0 }
 0x156   : > { %585 = vst [vmem:[%s1313_s21 + $0x38] sm:$0xff] %v352_v30  ;;  %v809_v35 = vpop.f32.mrb[2].mxu1 }
 0x157   : > { %589 = vst [vmem:[%s1313_s21 + $0x58] sm:$0xff] %v809_v35  ;;  %v509_v37 = vpop.f32.mrb[3].mxu1 }
 0x158   : > { %v356_v32 = vpop.f32.mrb[6].mxu0  ;;  %586 = vst [vmem:[%s1313_s21 + $0x40] sm:$0xff] %v509_v37 }
 0x159   : > { %587 = vst [vmem:[%s1313_s21 + $0x48] sm:$0xff] %v356_v32  ;;  %v358_v34 = vpop.f32.mrb[7].mxu0 }
 0x15a   : > { %588 = vst [vmem:[%s1313_s21 + $0x50] sm:$0xff] %v358_v34  ;;  %v812_v39 = vpop.f32.mrb[4].mxu1 }
 0x15b   : > { %595 = vst [vmem:[%s1313_s21 + $0x88] sm:$0xff] %v812_v39  ;;  %v519_v41 = vpop.f32.mrb[5].mxu1 }
 0x15c   : > { %v362_v36 = vpop.f32.mrb[8].mxu0  ;;  %592 = vst [vmem:[%s1313_s21 + $0x70] sm:$0xff] %v519_v41 }
 0x15d   : > { %590 = vst [vmem:[%s1313_s21 + $0x60] sm:$0xff] %v362_v36  ;;  %v364_v38 = vpop.f32.mrb[9].mxu0 }
 0x15e   : > { %591 = vst [vmem:[%s1313_s21 + $0x68] sm:$0xff] %v364_v38  ;;  %v815_v43 = vpop.f32.mrb[6].mxu1 }
 0x15f   : > { %601 = vst [vmem:[%s1313_s21 + $0xb8] sm:$0xff] %v815_v43  ;;  %v529_v45 = vpop.f32.mrb[7].mxu1 }
 0x160   : > { %v368_v40 = vpop.f32.mrb[10].mxu0  ;;  %598 = vst [vmem:[%s1313_s21 + $0xa0] sm:$0xff] %v529_v45 }
 0x161   : > { %593 = vst [vmem:[%s1313_s21 + $0x78] sm:$0xff] %v368_v40  ;;  %v370_v42 = vpop.f32.mrb[11].mxu0 }
 0x162   : > { %594 = vst [vmem:[%s1313_s21 + $0x80] sm:$0xff] %v370_v42  ;;  %v818_v47 = vpop.f32.mrb[8].mxu1 }
 0x163   : > { %607 = vst [vmem:[%s1313_s21 + $0xe8] sm:$0xff] %v818_v47  ;;  %v539_v49 = vpop.f32.mrb[9].mxu1 }
 0x164   : > { %v374_v44 = vpop.f32.mrb[12].mxu0  ;;  %604 = vst [vmem:[%s1313_s21 + $0xd0] sm:$0xff] %v539_v49 }
 0x165   : > { %596 = vst [vmem:[%s1313_s21 + $0x90] sm:$0xff] %v374_v44  ;;  %v376_v46 = vpop.f32.mrb[13].mxu0 }
 0x166   : > { %597 = vst [vmem:[%s1313_s21 + $0x98] sm:$0xff] %v376_v46  ;;  %v821_v51 = vpop.f32.mrb[10].mxu1 }
 0x167   : > { %613 = vst [vmem:[%s1313_s21 + $0x118] sm:$0xff] %v821_v51  ;;  %v549_v53 = vpop.f32.mrb[11].mxu1 }
 0x168   : > { %v380_v48 = vpop.f32.mrb[14].mxu0  ;;  %610 = vst [vmem:[%s1313_s21 + $0x100] sm:$0xff] %v549_v53 }
 0x169   : > { %599 = vst [vmem:[%s1313_s21 + $0xa8] sm:$0xff] %v380_v48  ;;  %v382_v50 = vpop.f32.mrb[15].mxu0 }
 0x16a   : > { %600 = vst [vmem:[%s1313_s21 + $0xb0] sm:$0xff] %v382_v50  ;;  %v824_v55 = vpop.f32.mrb[12].mxu1 }
 0x16b   : > { %619 = vst [vmem:[%s1313_s21 + $0x148] sm:$0xff] %v824_v55  ;;  %v559_v57 = vpop.f32.mrb[13].mxu1 }
 0x16c   : > { %v386_v52 = vpop.f32.mrb[16].mxu0  ;;  %616 = vst [vmem:[%s1313_s21 + $0x130] sm:$0xff] %v559_v57 }
 0x16d   : > { %602 = vst [vmem:[%s1313_s21 + $0xc0] sm:$0xff] %v386_v52  ;;  %v388_v54 = vpop.f32.mrb[17].mxu0 }
 0x16e   : > { %603 = vst [vmem:[%s1313_s21 + $0xc8] sm:$0xff] %v388_v54  ;;  %v827_v59 = vpop.f32.mrb[14].mxu1 }
 0x16f   : > { %625 = vst [vmem:[%s1313_s21 + $0x178] sm:$0xff] %v827_v59  ;;  %v569_v61 = vpop.f32.mrb[15].mxu1 }
 0x170   : > { %v392_v56 = vpop.f32.mrb[18].mxu0  ;;  %622 = vst [vmem:[%s1313_s21 + $0x160] sm:$0xff] %v569_v61 }
 0x171   : > { %605 = vst [vmem:[%s1313_s21 + $0xd8] sm:$0xff] %v392_v56  ;;  %v394_v58 = vpop.f32.mrb[19].mxu0 }
 0x172   : > { %606 = vst [vmem:[%s1313_s21 + $0xe0] sm:$0xff] %v394_v58 }
 0x174   : > { %v398_v60 = vpop.f32.mrb[20].mxu0 }
 0x175   : > { %608 = vst [vmem:[%s1313_s21 + $0xf0] sm:$0xff] %v398_v60  ;;  %v400_v62 = vpop.f32.mrb[21].mxu0 }
 0x176   : > { %609 = vst [vmem:[%s1313_s21 + $0xf8] sm:$0xff] %v400_v62 }
 0x178   : > { %v404_v63 = vpop.f32.mrb[22].mxu0 }
 0x179   : > { %611 = vst [vmem:[%s1313_s21 + $0x108] sm:$0xff] %v404_v63  ;;  %v406_v1 = vpop.f32.mrb[23].mxu0 }
 0x17a   : > { %612 = vst [vmem:[%s1313_s21 + $0x110] sm:$0xff] %v406_v1 }
 0x17c   : > { %v410_v2 = vpop.f32.mrb[24].mxu0 }
 0x17d   : > { %614 = vst [vmem:[%s1313_s21 + $0x120] sm:$0xff] %v410_v2  ;;  %v412_v3 = vpop.f32.mrb[25].mxu0 }
 0x17e   : > { %615 = vst [vmem:[%s1313_s21 + $0x128] sm:$0xff] %v412_v3 }
 0x180   : > { %v416_v4 = vpop.f32.mrb[26].mxu0 }
 0x181   : > { %617 = vst [vmem:[%s1313_s21 + $0x138] sm:$0xff] %v416_v4  ;;  %v418_v5 = vpop.f32.mrb[27].mxu0 }
 0x182   : > { %618 = vst [vmem:[%s1313_s21 + $0x140] sm:$0xff] %v418_v5 }
 0x184   : > { %v422_v6 = vpop.f32.mrb[28].mxu0 }
 0x185   : > { %620 = vst [vmem:[%s1313_s21 + $0x150] sm:$0xff] %v422_v6  ;;  %v424_v7 = vpop.f32.mrb[29].mxu0 }
 0x186   : > { %621 = vst [vmem:[%s1313_s21 + $0x158] sm:$0xff] %v424_v7 }
 0x188   : > { %v428_v8 = vpop.f32.mrb[30].mxu0 }
 0x189   : > { %623 = vst [vmem:[%s1313_s21 + $0x168] sm:$0xff] %v428_v8  ;;  %v430_v9 = vpop.f32.mrb[31].mxu0 }
 0x18a   : > { %624 = vst [vmem:[%s1313_s21 + $0x170] sm:$0xff] %v430_v9 }
 0x18b   : > { %1029 = shalt.err (!%p1026_p7)
}
 0x18c   : > { %s1030_s28 = scalar_lea.hbm %s1366_s10, 6144  ;;  %s1034_s30 = scalar_lea.hbm %s1418_s4, 12288 }
 0x18d   : > { %p1031_p9 = scmp.ne.s32.totalorder %s1366_s10, %s1030_s28  ;;  %p1035_p5 = scmp.lt.u32.totalorder %s1366_s10, %s1418_s4 }
 0x18e   : > { %p1036_p11 = scmp.lt.u32.totalorder %s1034_s30, %s1030_s28  ;;  %p1038_p4 = scmp.lt.u32.totalorder %s1030_s28, %s1366_s10 }
 0x18f   : > { %p1032_p2 = pnand %p1031_p9, %p1214_p12 }
 0x190   : > { %p1037_p1 = por %p1036_p11, %p1035_p5 }
 0x191   : > { %p1033_p0 = pneg %p1032_p2 }
 0x192   : > { %p1039_p6 = por %p1038_p4, %p1037_p1 }
 0x194   : > { %p1040_p8 = pnand %p1039_p6, %p1033_p0 }
 0x196   : > { %1043 = shalt.err (!%p1040_p8)
}
 0x197   : > { %s1096_s9 = smov 384   ;;  %s1097_s19 = smov 24  }
 0x198   : > { %900 = dma.vmem_to_hbm [thread:$0]  (%p1214_p12), %s1368_s26, 6144, %s1366_s10, %s627_s3, %s1096_s9, %s1096_s9, %s1097_s19  }
 0x199 PF: > { %s656_s21 = sand.u32 1, %s1074_s15   ;;  %p1433_p10 = scmp.ne.s32.totalorder %s1423_s20, 0 }
 0x19a   : > { %p1434_p13 = scmp.ge.s32.totalorder %s1086_s17, 2  ;;  %s657_s5 = scalar_lea.sflag [#allocation6], %s656_s21 }
 0x19c   : > { %p911_p3 = pnand %p1434_p13, %p1433_p10 }
 0x19e   : > { %1069 = dma.done.wait (!%p911_p3), %s657_s5, 6144  }
 0x19f   : > { %1071 = vsyncadd (!%p911_p3), %s657_s5, 4294961152  ;;  %p19_p7 = scmp.ge.s32.totalorder %s1179_s25, 4   ;;  %s1435_s15 = smov %s1078_s0 }
 0x1a0   : > { %s1436_s0 = smov %s1082_s16  ;;  %s1437_s16 = smov %s1210_s14 }
 0x1a1   : > { %s1438_s17 = smov %s1179_s25  ;;  %21 = sbr.rel (!%p19_p7) target bundleno = 6 (0x6), region = 81 }
 0x1a8   :  { %662 = vsyncpa [#allocation5], 1 }
 0x1a9   :  { %664 = vsyncpa [#allocation5 + $0x1], 1 }
 0x1aa   :  { %665 = vsyncpa [#allocation8], 1 }
 0x1ab   :  { %666 = vsyncpa [#allocation6], 1 }
 0x1ac   :  { %668 = vsyncpa [#allocation6 + $0x1], 1 }

</bundles_post_ra>
